<compile_context>
chip_gen: v5e
topology: v5e:2x2
jax: 0.10.0
libtpu: 0.0.40
codegen_flags: <defaults>
</compile_context>

<pallas_src>
import functools

import jax
import jax.numpy as jnp
from jax import lax
from jax.experimental import pallas as pl
from jax.experimental.pallas import tpu as pltpu


def _round_up(x, m):
    return ((x + m - 1) // m) * m


def _sublane_granularity(dtype):
    # Sub-32-bit dtypes pack along sublanes: native second-minor tile is
    # 8 rows for 4-byte, 16 for 2-byte, 32 for 1-byte dtypes.
    return 8 * (4 // jnp.dtype(dtype).itemsize)


def _pick_tm(m, tm_cap, gran):
    """Rows per tile: a multiple of `gran`, <= tm_cap.

    Prefers a tile that divides `m` exactly (no wrapper-side pad/slice HBM
    passes) and, when m allows it, leaves >= 2 grid steps so both of v7x's
    TensorCores get work (megacore shards grid steps, not rows within a step).
    """
    limit = max(gran, (min(tm_cap, m) // gran) * gran)
    best = gran
    for cand in range(limit, gran - 1, -gran):
        if m % cand == 0:
            best = cand
            break
    if best == m and m >= 2 * gran:
        # Single grid step: halve the tile so the grid has >= 2 steps.
        half = ((m // 2) // gran) * gran
        for cand in range(min(half, limit), gran - 1, -gran):
            if m % cand == 0:
                best = cand
                break
    return best


def fcn_ln_kernel(x_ref, w1_ref, b1_ref, w2_ref, b2_ref, g_ref, beta_ref, o_ref,
                  *, fcn_layers):
    """Whole FCN_LN stack on one (TM, H) row tile.

    x_ref:    (TM, H)    bf16 (or f32) activations for the current row tile
    w1_ref:   (L, H, H)  bf16 lin1 weights, stored (in, out): y = x @ W
    b1_ref:   (L, H)     f32
    w2_ref:   (L, H, H)  bf16 lin2 weights, stored (in, out)
    b2_ref:   (L, H)     f32
    g_ref:    (L, H)     f32 LayerNorm gamma
    beta_ref: (L, H)     f32 LayerNorm beta
    o_ref:    (TM, H)    bf16 output
    """
    t = x_ref[...].astype(jnp.float32)          # residual/LN math in f32
    for l in range(fcn_layers):                 # static, small (fcn_layers=2)
        # --- FFN: bf16 MXU operands, f32 accumulation ---
        h = jnp.dot(t.astype(jnp.bfloat16), w1_ref[l],
                    preferred_element_type=jnp.float32)
        h = jnp.maximum(h + b1_ref[l][None, :], 0.0)   # relu (gelu_activation=False)
        y = jnp.dot(h.astype(jnp.bfloat16), w2_ref[l],
                    preferred_element_type=jnp.float32)
        y = y + b2_ref[l][None, :]
        # dropout(p, training=False) == identity
        # --- residual + LayerNorm (eps=1e-12), all f32 ---
        t = t + y
        mean = jnp.mean(t, axis=-1, keepdims=True)
        ctr = t - mean
        var = jnp.mean(ctr * ctr, axis=-1, keepdims=True)
        t = ctr * lax.rsqrt(var + 1e-12)
        t = t * g_ref[l][None, :] + beta_ref[l][None, :]
    o_ref[...] = t.astype(o_ref.dtype)          # bf16 store path (halves out traffic)


def fcn_ln_pallas(x, w1, b1, w2, b2, gamma, beta, *, tm=1024,
                  out_dtype=jnp.bfloat16):
    """x: (B, S, H), any float dtype (bf16 recommended to halve HBM traffic).

    Returns (B, S, H) in `out_dtype` (default bf16).
    """
    B, S, H = x.shape
    L = w1.shape[0]
    M = B * S
    x2d = x.reshape(M, H)   # streamed in the caller's dtype; no wrapper-side cast

    # Row-tile selection: dtype-aware sublane granularity, divisor of M where
    # possible (avoids pad/slice HBM passes), grid >= 2 when M allows (v7x).
    gran = max(_sublane_granularity(x2d.dtype), _sublane_granularity(out_dtype))
    M_g = _round_up(M, gran)
    TM = _pick_tm(M_g, tm, gran)
    if TM < 128 and M_g > 8 * tm:
        # Awkward factorization (e.g. gran * large prime): divisor-sized tiles
        # would be grid-overhead bound; fall back to padding the slab (costs
        # one extra pad + slice HBM pass, only in this rare case).
        TM = max(gran, (min(tm, 1024) // gran) * gran)
    M_pad = _round_up(M, TM)
    if M_pad != M:
        # Padded rows are processed independently (per-row LN) and sliced off.
        x2d = jnp.pad(x2d, ((0, M_pad - M), (0, 0)))
    grid = (M_pad // TM,)

    # bf16 weights for the MXU; biases / LN params stay f32.
    w1_bf = w1.astype(jnp.bfloat16)
    w2_bf = w2.astype(jnp.bfloat16)
    b1_f = b1.astype(jnp.float32)
    b2_f = b2.astype(jnp.float32)
    g_f = gamma.astype(jnp.float32)
    bt_f = beta.astype(jnp.float32)

    # VMEM budget: double-buffered activation tiles (in + out) + resident
    # params (double-buffered by the pipeline even with a constant block
    # index) + f32 in-kernel temporaries, plus headroom. Capped under v7x's
    # 32 MiB default scoped VMEM (64 MiB physical; 128 MiB on v5e/v6e).
    in_b = jnp.dtype(x2d.dtype).itemsize
    out_b = jnp.dtype(out_dtype).itemsize
    act_bytes = 2 * TM * H * (in_b + out_b)          # x + out tiles, 2 buffers each
    w_bytes = 2 * 2 * L * H * H * 2                  # w1 + w2 (bf16), 2 buffers each
    small_bytes = 2 * 4 * L * H * 4                  # biases / gamma / beta
    tmp_bytes = 4 * TM * H * 4                       # t, h, y, ctr live f32 values
    vmem_limit = min(act_bytes + w_bytes + small_bytes + tmp_bytes + (4 << 20),
                     32 << 20)

    param_bytes = (w1_bf.size + w2_bf.size) * 2 + (b1_f.size + b2_f.size +
                                                   g_f.size + bt_f.size) * 4
    cost = pl.CostEstimate(
        flops=4 * L * M_pad * H * H,                 # two HxH matmuls per layer
        transcendentals=L * M_pad,                   # one rsqrt per row per layer
        bytes_accessed=M_pad * H * (in_b + out_b) + param_bytes,
    )

    kernel = functools.partial(fcn_ln_kernel, fcn_layers=L)
    out2d = pl.pallas_call(
        kernel,
        out_shape=jax.ShapeDtypeStruct((M_pad, H), out_dtype),
        grid=grid,
        in_specs=[
            pl.BlockSpec((TM, H), lambda i: (i, 0)),       # x: streamed row tiles
            pl.BlockSpec((L, H, H), lambda i: (0, 0, 0)),  # w1: resident
            pl.BlockSpec((L, H), lambda i: (0, 0)),        # b1: resident
            pl.BlockSpec((L, H, H), lambda i: (0, 0, 0)),  # w2: resident
            pl.BlockSpec((L, H), lambda i: (0, 0)),        # b2: resident
            pl.BlockSpec((L, H), lambda i: (0, 0)),        # gamma: resident
            pl.BlockSpec((L, H), lambda i: (0, 0)),        # beta: resident
        ],
        out_specs=pl.BlockSpec((TM, H), lambda i: (i, 0)),
        compiler_params=pltpu.CompilerParams(
            dimension_semantics=("parallel",),             # megacore on v7x
            vmem_limit_bytes=int(vmem_limit),
        ),
        cost_estimate=cost,
    )(x2d, w1_bf, b1_f, w2_bf, b2_f, g_f, bt_f)

    if M_pad != M:
        out2d = out2d[:M]
    return out2d.reshape(B, S, H)


def fcn_ln_reference(x, w1, b1, w2, b2, gamma, beta):
    """Pure-JAX f32 reference of the same forward pass."""
    L = w1.shape[0]
    t = x.astype(jnp.float32)
    for l in range(L):
        h = jnp.maximum(t @ w1[l] + b1[l], 0.0)
        y = h @ w2[l] + b2[l]
        t = t + y
        mean = jnp.mean(t, axis=-1, keepdims=True)
        var = jnp.mean((t - mean) ** 2, axis=-1, keepdims=True)
        t = (t - mean) / jnp.sqrt(var + 1e-12)
        t = t * gamma[l] + beta[l]
    return t


if __name__ == "__main__":
    # Small, TPU-friendly shapes: batch=2, seq=16, hidden=128, fcn_layers=2.
    # (M = 32 rows -> TM = 16, grid = (2,): exercises the multi-step pipeline
    # and v7x megacore sharding even at toy size.)
    B, S, H, L = 2, 16, 128, 2

    key = jax.random.PRNGKey(0)
    k_x, k_w1, k_b1, k_w2, k_b2, k_g, k_bt = jax.random.split(key, 7)

    x_f32 = jax.random.normal(k_x, (B, S, H), dtype=jnp.float32)
    # Activations are streamed HBM<->VMEM in bf16 end-to-end (the big
    # bandwidth win); the reference consumes the same bf16-quantized input so
    # the comparison isolates in-kernel error.
    x_bf16 = x_f32.astype(jnp.bfloat16)

    # Deterministic synthetic parameters (shapes match nn.Linear(H, H) x2 and
    # nn.LayerNorm(H) per layer). Linear weights stored (in, out): y = x @ W + b.
    scale = 1.0 / jnp.sqrt(jnp.float32(H))
    w1 = jax.random.uniform(k_w1, (L, H, H), jnp.float32, -scale, scale)
    b1 = jax.random.uniform(k_b1, (L, H), jnp.float32, -scale, scale)
    w2 = jax.random.uniform(k_w2, (L, H, H), jnp.float32, -scale, scale)
    b2 = jax.random.uniform(k_b2, (L, H), jnp.float32, -scale, scale)
    gamma = 1.0 + 0.1 * jax.random.normal(k_g, (L, H), dtype=jnp.float32)
    beta = 0.1 * jax.random.normal(k_bt, (L, H), dtype=jnp.float32)

    out = jax.block_until_ready(
        fcn_ln_pallas(x_bf16, w1, b1, w2, b2, gamma, beta))
    ref = jax.block_until_ready(
        fcn_ln_reference(x_bf16.astype(jnp.float32), w1, b1, w2, b2, gamma, beta))

    assert out.shape == (B, S, H), out.shape
    assert out.dtype == jnp.bfloat16, out.dtype
    # Tolerance accounts for bf16 MXU operands (f32 accumulation) and the bf16
    # output store vs the f32 reference.
    max_err = float(jnp.max(jnp.abs(out.astype(jnp.float32) - ref)))
    if max_err > 7.5e-2:
        raise AssertionError(f"Pallas kernel mismatch vs reference: max_err={max_err}")

    print("KERNEL_OK")
</pallas_src>

<mosaic_0001>
module attributes {stable_mosaic.version = 11 : i64} {
  func.func @fcn_ln_kernel(%arg0: i32, %arg1: memref<16x128xbf16, #tpu.memory_space<vmem>>, %arg2: memref<2x128x128xbf16, #tpu.memory_space<vmem>>, %arg3: memref<2x128xf32, #tpu.memory_space<vmem>>, %arg4: memref<2x128x128xbf16, #tpu.memory_space<vmem>>, %arg5: memref<2x128xf32, #tpu.memory_space<vmem>>, %arg6: memref<2x128xf32, #tpu.memory_space<vmem>>, %arg7: memref<2x128xf32, #tpu.memory_space<vmem>>, %arg8: memref<16x128xbf16, #tpu.memory_space<vmem>>) attributes {dimension_semantics = [#tpu.dimension_semantics<parallel>], iteration_bounds = array<i64: 2>, scalar_prefetch = 0 : i64, scratch_operands = 0 : i64, tpu.core_type = #tpu.core_type<tc>, window_params = [{transform_indices = @transform_0, window_bounds = array<i64: 16, 128>}, {pipeline_mode = #tpu.pipeline_mode<synchronous>, transform_indices = @transform_1, window_bounds = array<i64: 2, 128, 128>}, {pipeline_mode = #tpu.pipeline_mode<synchronous>, transform_indices = @transform_2, window_bounds = array<i64: 2, 128>}, {pipeline_mode = #tpu.pipeline_mode<synchronous>, transform_indices = @transform_3, window_bounds = array<i64: 2, 128, 128>}, {pipeline_mode = #tpu.pipeline_mode<synchronous>, transform_indices = @transform_4, window_bounds = array<i64: 2, 128>}, {pipeline_mode = #tpu.pipeline_mode<synchronous>, transform_indices = @transform_5, window_bounds = array<i64: 2, 128>}, {pipeline_mode = #tpu.pipeline_mode<synchronous>, transform_indices = @transform_6, window_bounds = array<i64: 2, 128>}, {transform_indices = @transform_7, window_bounds = array<i64: 16, 128>}]} {
    %c0 = arith.constant 0 : index
    %c0_0 = arith.constant 0 : index
    %0 = vector.load %arg1[%c0, %c0_0] : memref<16x128xbf16, #tpu.memory_space<vmem>>, vector<16x128xbf16>
    %1 = arith.extf %0 : vector<16x128xbf16> to vector<16x128xf32>
    %2 = arith.truncf %1 : vector<16x128xf32> to vector<16x128xbf16>
    %c0_1 = arith.constant 0 : index
    %c0_2 = arith.constant 0 : index
    %c0_3 = arith.constant 0 : index
    %3 = vector.load %arg2[%c0_1, %c0_2, %c0_3] : memref<2x128x128xbf16, #tpu.memory_space<vmem>>, vector<1x128x128xbf16>
    %4 = vector.shape_cast %3 : vector<1x128x128xbf16> to vector<128x128xbf16>
    %cst = arith.constant dense<0.000000e+00> : vector<16x128xf32>
    %5 = tpu.matmul %2, %4, %cst {dimension_numbers = #tpu.dot_dimension_numbers<[1], [0], [0], [1], [0, 0, 1, 1], [], []>} : vector<16x128xbf16>, vector<128x128xbf16>, vector<16x128xf32> -> vector<16x128xf32>
    %c0_4 = arith.constant 0 : index
    %c0_5 = arith.constant 0 : index
    %6 = vector.load %arg3[%c0_4, %c0_5] : memref<2x128xf32, #tpu.memory_space<vmem>>, vector<1x128xf32>
    %7 = vector.shape_cast %6 : vector<1x128xf32> to vector<128xf32>
    %8 = vector.shape_cast %7 : vector<128xf32> to vector<1x128xf32>
    %9 = vector.broadcast %8 : vector<1x128xf32> to vector<16x128xf32>
    %10 = arith.addf %5, %9 : vector<16x128xf32>
    %cst_6 = arith.constant 0.000000e+00 : f32
    %11 = vector.broadcast %cst_6 : f32 to vector<16x128xf32>
    %12 = arith.maximumf %10, %11 : vector<16x128xf32>
    %13 = arith.truncf %12 : vector<16x128xf32> to vector<16x128xbf16>
    %c0_7 = arith.constant 0 : index
    %c0_8 = arith.constant 0 : index
    %c0_9 = arith.constant 0 : index
    %14 = vector.load %arg4[%c0_7, %c0_8, %c0_9] : memref<2x128x128xbf16, #tpu.memory_space<vmem>>, vector<1x128x128xbf16>
    %15 = vector.shape_cast %14 : vector<1x128x128xbf16> to vector<128x128xbf16>
    %cst_10 = arith.constant dense<0.000000e+00> : vector<16x128xf32>
    %16 = tpu.matmul %13, %15, %cst_10 {dimension_numbers = #tpu.dot_dimension_numbers<[1], [0], [0], [1], [0, 0, 1, 1], [], []>} : vector<16x128xbf16>, vector<128x128xbf16>, vector<16x128xf32> -> vector<16x128xf32>
    %c0_11 = arith.constant 0 : index
    %c0_12 = arith.constant 0 : index
    %17 = vector.load %arg5[%c0_11, %c0_12] : memref<2x128xf32, #tpu.memory_space<vmem>>, vector<1x128xf32>
    %18 = vector.shape_cast %17 : vector<1x128xf32> to vector<128xf32>
    %19 = vector.shape_cast %18 : vector<128xf32> to vector<1x128xf32>
    %20 = vector.broadcast %19 : vector<1x128xf32> to vector<16x128xf32>
    %21 = arith.addf %16, %20 : vector<16x128xf32>
    %22 = arith.addf %1, %21 : vector<16x128xf32>
    %cst_13 = arith.constant dense<0.000000e+00> : vector<16xf32>
    %23 = vector.multi_reduction <add>, %22, %cst_13 [1] : vector<16x128xf32> to vector<16xf32>
    %24 = vector.shape_cast %23 : vector<16xf32> to vector<16x1xf32>
    %cst_14 = arith.constant 1.280000e+02 : f32
    %25 = vector.broadcast %cst_14 : f32 to vector<16x1xf32>
    %26 = arith.divf %24, %25 : vector<16x1xf32>
    %27 = vector.broadcast %26 : vector<16x1xf32> to vector<16x128xf32>
    %28 = arith.subf %22, %27 : vector<16x128xf32>
    %29 = arith.mulf %28, %28 : vector<16x128xf32>
    %cst_15 = arith.constant dense<0.000000e+00> : vector<16xf32>
    %30 = vector.multi_reduction <add>, %29, %cst_15 [1] : vector<16x128xf32> to vector<16xf32>
    %31 = vector.shape_cast %30 : vector<16xf32> to vector<16x1xf32>
    %cst_16 = arith.constant 1.280000e+02 : f32
    %32 = vector.broadcast %cst_16 : f32 to vector<16x1xf32>
    %33 = arith.divf %31, %32 : vector<16x1xf32>
    %cst_17 = arith.constant 9.99999996E-13 : f32
    %34 = vector.broadcast %cst_17 : f32 to vector<16x1xf32>
    %35 = arith.addf %33, %34 : vector<16x1xf32>
    %36 = math.rsqrt %35 : vector<16x1xf32>
    %37 = vector.broadcast %36 : vector<16x1xf32> to vector<16x128xf32>
    %38 = arith.mulf %28, %37 : vector<16x128xf32>
    %c0_18 = arith.constant 0 : index
    %c0_19 = arith.constant 0 : index
    %39 = vector.load %arg6[%c0_18, %c0_19] : memref<2x128xf32, #tpu.memory_space<vmem>>, vector<1x128xf32>
    %40 = vector.shape_cast %39 : vector<1x128xf32> to vector<128xf32>
    %41 = vector.shape_cast %40 : vector<128xf32> to vector<1x128xf32>
    %42 = vector.broadcast %41 : vector<1x128xf32> to vector<16x128xf32>
    %43 = arith.mulf %38, %42 : vector<16x128xf32>
    %c0_20 = arith.constant 0 : index
    %c0_21 = arith.constant 0 : index
    %44 = vector.load %arg7[%c0_20, %c0_21] : memref<2x128xf32, #tpu.memory_space<vmem>>, vector<1x128xf32>
    %45 = vector.shape_cast %44 : vector<1x128xf32> to vector<128xf32>
    %46 = vector.shape_cast %45 : vector<128xf32> to vector<1x128xf32>
    %47 = vector.broadcast %46 : vector<1x128xf32> to vector<16x128xf32>
    %48 = arith.addf %43, %47 : vector<16x128xf32>
    %49 = arith.truncf %48 : vector<16x128xf32> to vector<16x128xbf16>
    %c1 = arith.constant 1 : index
    %c0_22 = arith.constant 0 : index
    %c0_23 = arith.constant 0 : index
    %50 = vector.load %arg2[%c1, %c0_22, %c0_23] : memref<2x128x128xbf16, #tpu.memory_space<vmem>>, vector<1x128x128xbf16>
    %51 = vector.shape_cast %50 : vector<1x128x128xbf16> to vector<128x128xbf16>
    %cst_24 = arith.constant dense<0.000000e+00> : vector<16x128xf32>
    %52 = tpu.matmul %49, %51, %cst_24 {dimension_numbers = #tpu.dot_dimension_numbers<[1], [0], [0], [1], [0, 0, 1, 1], [], []>} : vector<16x128xbf16>, vector<128x128xbf16>, vector<16x128xf32> -> vector<16x128xf32>
    %c1_25 = arith.constant 1 : index
    %c0_26 = arith.constant 0 : index
    %53 = vector.load %arg3[%c1_25, %c0_26] : memref<2x128xf32, #tpu.memory_space<vmem>>, vector<1x128xf32>
    %54 = vector.shape_cast %53 : vector<1x128xf32> to vector<128xf32>
    %55 = vector.shape_cast %54 : vector<128xf32> to vector<1x128xf32>
    %56 = vector.broadcast %55 : vector<1x128xf32> to vector<16x128xf32>
    %57 = arith.addf %52, %56 : vector<16x128xf32>
    %cst_27 = arith.constant 0.000000e+00 : f32
    %58 = vector.broadcast %cst_27 : f32 to vector<16x128xf32>
    %59 = arith.maximumf %57, %58 : vector<16x128xf32>
    %60 = arith.truncf %59 : vector<16x128xf32> to vector<16x128xbf16>
    %c1_28 = arith.constant 1 : index
    %c0_29 = arith.constant 0 : index
    %c0_30 = arith.constant 0 : index
    %61 = vector.load %arg4[%c1_28, %c0_29, %c0_30] : memref<2x128x128xbf16, #tpu.memory_space<vmem>>, vector<1x128x128xbf16>
    %62 = vector.shape_cast %61 : vector<1x128x128xbf16> to vector<128x128xbf16>
    %cst_31 = arith.constant dense<0.000000e+00> : vector<16x128xf32>
    %63 = tpu.matmul %60, %62, %cst_31 {dimension_numbers = #tpu.dot_dimension_numbers<[1], [0], [0], [1], [0, 0, 1, 1], [], []>} : vector<16x128xbf16>, vector<128x128xbf16>, vector<16x128xf32> -> vector<16x128xf32>
    %c1_32 = arith.constant 1 : index
    %c0_33 = arith.constant 0 : index
    %64 = vector.load %arg5[%c1_32, %c0_33] : memref<2x128xf32, #tpu.memory_space<vmem>>, vector<1x128xf32>
    %65 = vector.shape_cast %64 : vector<1x128xf32> to vector<128xf32>
    %66 = vector.shape_cast %65 : vector<128xf32> to vector<1x128xf32>
    %67 = vector.broadcast %66 : vector<1x128xf32> to vector<16x128xf32>
    %68 = arith.addf %63, %67 : vector<16x128xf32>
    %69 = arith.addf %48, %68 : vector<16x128xf32>
    %cst_34 = arith.constant dense<0.000000e+00> : vector<16xf32>
    %70 = vector.multi_reduction <add>, %69, %cst_34 [1] : vector<16x128xf32> to vector<16xf32>
    %71 = vector.shape_cast %70 : vector<16xf32> to vector<16x1xf32>
    %cst_35 = arith.constant 1.280000e+02 : f32
    %72 = vector.broadcast %cst_35 : f32 to vector<16x1xf32>
    %73 = arith.divf %71, %72 : vector<16x1xf32>
    %74 = vector.broadcast %73 : vector<16x1xf32> to vector<16x128xf32>
    %75 = arith.subf %69, %74 : vector<16x128xf32>
    %76 = arith.mulf %75, %75 : vector<16x128xf32>
    %cst_36 = arith.constant dense<0.000000e+00> : vector<16xf32>
    %77 = vector.multi_reduction <add>, %76, %cst_36 [1] : vector<16x128xf32> to vector<16xf32>
    %78 = vector.shape_cast %77 : vector<16xf32> to vector<16x1xf32>
    %cst_37 = arith.constant 1.280000e+02 : f32
    %79 = vector.broadcast %cst_37 : f32 to vector<16x1xf32>
    %80 = arith.divf %78, %79 : vector<16x1xf32>
    %cst_38 = arith.constant 9.99999996E-13 : f32
    %81 = vector.broadcast %cst_38 : f32 to vector<16x1xf32>
    %82 = arith.addf %80, %81 : vector<16x1xf32>
    %83 = math.rsqrt %82 : vector<16x1xf32>
    %84 = vector.broadcast %83 : vector<16x1xf32> to vector<16x128xf32>
    %85 = arith.mulf %75, %84 : vector<16x128xf32>
    %c1_39 = arith.constant 1 : index
    %c0_40 = arith.constant 0 : index
    %86 = vector.load %arg6[%c1_39, %c0_40] : memref<2x128xf32, #tpu.memory_space<vmem>>, vector<1x128xf32>
    %87 = vector.shape_cast %86 : vector<1x128xf32> to vector<128xf32>
    %88 = vector.shape_cast %87 : vector<128xf32> to vector<1x128xf32>
    %89 = vector.broadcast %88 : vector<1x128xf32> to vector<16x128xf32>
    %90 = arith.mulf %85, %89 : vector<16x128xf32>
    %c1_41 = arith.constant 1 : index
    %c0_42 = arith.constant 0 : index
    %91 = vector.load %arg7[%c1_41, %c0_42] : memref<2x128xf32, #tpu.memory_space<vmem>>, vector<1x128xf32>
    %92 = vector.shape_cast %91 : vector<1x128xf32> to vector<128xf32>
    %93 = vector.shape_cast %92 : vector<128xf32> to vector<1x128xf32>
    %94 = vector.broadcast %93 : vector<1x128xf32> to vector<16x128xf32>
    %95 = arith.addf %90, %94 : vector<16x128xf32>
    %96 = arith.truncf %95 : vector<16x128xf32> to vector<16x128xbf16>
    %c0_43 = arith.constant 0 : index
    %c0_44 = arith.constant 0 : index
    %97 = vector.load %arg8[%c0_43, %c0_44] : memref<16x128xbf16, #tpu.memory_space<vmem>>, vector<16x128xbf16>
    tpu.vector_store %arg8[%c0_43, %c0_44], %96 {strides = array<i32>} : memref<16x128xbf16, #tpu.memory_space<vmem>>, vector<16x128xbf16>,
    return
  }
  func.func @transform_0(%arg0: i32) -> (i32, i32) {
    %c0_i32 = arith.constant 0 : i32
    %c0_i32_0 = arith.constant 0 : i32
    return %arg0, %c0_i32 : i32, i32
  }
  func.func @transform_1(%arg0: i32) -> (i32, i32, i32) {
    %c0_i32 = arith.constant 0 : i32
    %c0_i32_0 = arith.constant 0 : i32
    %c0_i32_1 = arith.constant 0 : i32
    %c0_i32_2 = arith.constant 0 : i32
    return %c0_i32, %c0_i32_0, %c0_i32_1 : i32, i32, i32
  }
  func.func @transform_2(%arg0: i32) -> (i32, i32) {
    %c0_i32 = arith.constant 0 : i32
    %c0_i32_0 = arith.constant 0 : i32
    %c0_i32_1 = arith.constant 0 : i32
    return %c0_i32, %c0_i32_0 : i32, i32
  }
  func.func @transform_3(%arg0: i32) -> (i32, i32, i32) {
    %c0_i32 = arith.constant 0 : i32
    %c0_i32_0 = arith.constant 0 : i32
    %c0_i32_1 = arith.constant 0 : i32
    %c0_i32_2 = arith.constant 0 : i32
    return %c0_i32, %c0_i32_0, %c0_i32_1 : i32, i32, i32
  }
  func.func @transform_4(%arg0: i32) -> (i32, i32) {
    %c0_i32 = arith.constant 0 : i32
    %c0_i32_0 = arith.constant 0 : i32
    %c0_i32_1 = arith.constant 0 : i32
    return %c0_i32, %c0_i32_0 : i32, i32
  }
  func.func @transform_5(%arg0: i32) -> (i32, i32) {
    %c0_i32 = arith.constant 0 : i32
    %c0_i32_0 = arith.constant 0 : i32
    %c0_i32_1 = arith.constant 0 : i32
    return %c0_i32, %c0_i32_0 : i32, i32
  }
  func.func @transform_6(%arg0: i32) -> (i32, i32) {
    %c0_i32 = arith.constant 0 : i32
    %c0_i32_0 = arith.constant 0 : i32
    %c0_i32_1 = arith.constant 0 : i32
    return %c0_i32, %c0_i32_0 : i32, i32
  }
  func.func @transform_7(%arg0: i32) -> (i32, i32) {
    %c0_i32 = arith.constant 0 : i32
    %c0_i32_0 = arith.constant 0 : i32
    return %arg0, %c0_i32 : i32, i32
  }
}

</mosaic_0001>

<bundles_post_ra>
// kernel: tpu_custom_call.1
= control target key start
LH: loop header
LB: loop body
LE: loop exit
PB: predicated region body
PF: predicated region fallthrough
CT: control target
= control target key end

     0   :  { %s1721_s0 = inlined_call_operand.hbm [shape: bf16[32,128], index: 0, kind: input, shape index: {}]   ;;  %s1722_s1 = inlined_call_operand.hbm [shape: bf16[2,128,128], index: 1, kind: input, shape index: {}]   ;;  %s1723_s2 = inlined_call_operand.hbm [shape: f32[2,128], index: 2, kind: input, shape index: {}]   ;;  %s1724_s3 = inlined_call_operand.hbm [shape: bf16[2,128,128], index: 3, kind: input, shape index: {}]   ;;  %s1725_s4 = inlined_call_operand.vmem [shape: f32[2,128], index: 4, kind: input, shape index: {}]   ;;  %s1726_s5 = inlined_call_operand.vmem [shape: f32[2,128], index: 5, kind: input, shape index: {}]   ;;  %s1727_s6 = inlined_call_operand.hbm [shape: f32[2,128], index: 6, kind: input, shape index: {}]   ;;  %s1728_s7 = inlined_call_operand.hbm [shape: bf16[32,128], index: 7, kind: output, shape index: {}]  }
   0x1   :  { %1731 = sst [smem:[#allocation16_spill]] %s1722_s1 }
   0x2   :  { %12 = vsyncpa [#allocation3], 0 }
   0x3   :  { %14 = vsyncpa [#allocation3 + $0x1], 0 }
   0x4   :  { %15 = vsyncpa [#allocation6], 0 }
   0x5   :  { %16 = vsyncpa [#allocation9], 0 }
   0x6   :  { %17 = vsyncpa [#allocation4], 0 }
   0x7   :  { %19 = vsyncpa [#allocation4 + $0x1], 0  ;;  %s1519_s24 = smov 0   ;;  %s1521_s25 = smov 0  }
   0x8   :  { %s1523_s26 = smov 0   ;;  %s1525_s27 = smov 0  }
   0x9 LB: > { %s1540_s28 = sadd.s32 4294967295, %s1468_s27   ;;  %s940_s29 = sadd.s32 4294967294, %s1468_s27   ;;  %s1468_s27 = sphi %s1525_s27, %s1745_s27   ;;  %s1464_s26 = sphi %s1523_s26, %s1744_s26   ;;  %s1460_s25 = sphi %s1521_s25, %s1743_s25   ;;  %s1456_s24 = sphi %s1519_s24, %s1742_s24  }
   0xa   : > { %p45_p0 = scmp.ne.s32.totalorder %s1460_s25, %s1456_s24  ;;  %p46_p1 = scmp.eq.s32.totalorder %s1540_s28, 0 }
   0xb   : > { %p195_p2 = scmp.eq.s32.totalorder %s1540_s28, 1  ;;  %p201_p3 = scmp.eq.s32.totalorder %s940_s29, 1 }
   0xc   : > { %p1549_p4 = por %p46_p1, %p45_p0  ;;  %p941_p5 = scmp.ge.s32.totalorder %s1468_s27, 1 }
   0xd   : > { %p1554_p6 = por %p201_p3, %p45_p0  ;;  %p208_p7 = scmp.lt.s32.totalorder %s1468_s27, 3 }
   0xe   : > { %s1734_s1 = sld [smem:[#allocation16_spill]]  ;;  %s1470_s13 = smov [#allocation5]  }
   0xf   : > { %p1562_p8 = pnand %p941_p5, %p208_p7  ;;  %s221_s14 = sshll.u32 %s1470_s13, 4  ;;  %s222_s14 = int_to_ptr.vmem [resolvable:$true] %s221_s14 }
  0x10   : > { %s245_s18 = sshll.u32 %s1724_s3, 4  ;;  %s1729_s19 = smov 64   ;;  %s246_s18 = int_to_ptr.hbm [resolvable:$true] %s245_s18 }
  0x11   : > { %p1154_p9 = pneg %p1562_p8  ;;  %s1730_s20 = smov 4  }
  0x12   : > { %s1473_s21 = smov [#allocation8]   ;;  %s234_s9 = sshll.u32 %s1723_s2, 4  ;;  %s235_s9 = int_to_ptr.hbm [resolvable:$true] %s234_s9 }
  0x13   : > { %p1570_p10 = pnand %p1154_p9, %p46_p1  ;;  %s247_s22 = sshll.u32 %s1473_s21, 4  ;;  %s248_s22 = int_to_ptr.vmem [resolvable:$true] %s247_s22 }
  0x14   : > { %s219_s11 = sshll.u32 %s1734_s1, 4  ;;  %s266_s13 = sshll.u32 %s1727_s6, 4  ;;  %s220_s11 = int_to_ptr.hbm [resolvable:$true] %s219_s11  ;;  %s267_s13 = int_to_ptr.hbm [resolvable:$true] %s266_s13 }
  0x15   : > { %1157 = dma.hbm_to_vmem [thread:$0]  (!%p1570_p10), %s220_s11, 2048, %s222_s14, [#allocation6], %s1729_s19, %s1729_s19, %s1730_s20  }
  0x16   : > { %1163 = dma.hbm_to_vmem [thread:$0]  (!%p1570_p10), %s246_s18, 2048, %s248_s22, [#allocation9], %s1729_s19, %s1729_s19, %s1730_s20  }
  0x17   : > { %s1474_s14 = smov [#allocation7]   ;;  %s1475_s17 = smov [#allocation10]  }
  0x18   : > { %s236_s16 = sshll.u32 %s1474_s14, 4  ;;  %s268_s21 = sshll.u32 %s1475_s17, 4  ;;  %s237_s16 = int_to_ptr.vmem [resolvable:$true] %s236_s16  ;;  %s269_s21 = int_to_ptr.vmem [resolvable:$true] %s268_s21 }
  0x19   : > { %1160 = dma.hbm_to_vmem [thread:$0]  (!%p1570_p10), %s235_s9, 32, %s237_s16, [#allocation6]  }
  0x1a   : > { %1166 = dma.hbm_to_vmem [thread:$0]  (!%p1570_p10), %s267_s13, 32, %s269_s21, [#allocation9]  }
  0x1b   : > { %s1599_s18 = sadd.s32 1, %s1468_s27   ;;  %s32_s22 = sadd.s32 1, %s1464_s26 }
  0x1c   : > { %s29_s23 = ssub.s32 %s1468_s27, %s1599_s18  ;;  %p39_p12 = scmp.ne.s32.totalorder %s1464_s26, %s1460_s25 }
  0x1d   : > { %p30_p13 = scmp.eq.s32.totalorder %s29_s23, 0  ;;  %p40_p0 = scmp.eq.s32.totalorder %s1468_s27, 0 }
  0x1e   : > { %p1609_p3 = por %p195_p2, %p39_p12  ;;  %p1179_p5 = scmp.lt.s32.totalorder %s1468_s27, 2 }
  0x1f   : > { %s1615_s9 = scalar_select %p30_p13, %s1464_s26, %s32_s22  }
  0x20   : > { %p41_p7 = por %p40_p0, %p39_p12  ;;  %s279_s10 = sand.u32 1, %s1464_s26  }
  0x21   : > { %s947_s15 = sshll.u32 %s279_s10, 3  ;;  %s1094_s11 = sshll.u32 %s1468_s27, 3 }
  0x22   : > { %s288_s16 = scalar_lea.hbm %s1721_s0, %s1094_s11  ;;  %s283_s17 = scalar_lea.vmem [#allocation2], %s947_s15 }
  0x23   : > { %s291_s21 = sshll.u32 %s283_s17, 4  ;;  %s289_s23 = sshll.u32 %s288_s16, 4  ;;  %s292_s21 = int_to_ptr.vmem [resolvable:$true] %s291_s21  ;;  %s290_s23 = int_to_ptr.hbm [resolvable:$true] %s289_s23 }
  0x24   : > { %p1622_p2 = pnand %p1179_p5, %p41_p7  ;;  %s280_s22 = scalar_lea.sflag [#allocation3], %s279_s10 }
  0x25   : > { %s1364_s20 = sshra.s32 %s290_s23, 4  ;;  %s1371_s13 = scalar_lea.hbm %s1721_s0, 16  ;;  %s1365_s20 = int_to_ptr.hbm [resolvable:$true] %s1364_s20 }
  0x26   : > { %s1366_s1 = scalar_lea.hbm %s1365_s20, 8  ;;  %p1368_p10 = pneg %p1622_p2 }
  0x27   : > { %p1367_p9 = scmp.ne.s32.totalorder %s1365_s20, %s1366_s1  ;;  %p1372_p0 = scmp.lt.s32.totalorder %s1365_s20, %s1721_s0 }
  0x28   : > { %p1373_p5 = scmp.lt.s32.totalorder %s1371_s13, %s1366_s1 }
  0x29   : > { %p1369_p12 = pnand %p1368_p10, %p1367_p9 }
  0x2a   : > { %p1374_p7 = por %p1373_p5, %p1372_p0 }
  0x2b   : > { %p1370_p13 = pneg %p1369_p12 }
  0x2d   : > { %p1375_p11 = pnand %p1374_p7, %p1370_p13 }
  0x2f   : > { %1378 = shalt.err (!%p1375_p11)
}
  0x30   : > { %s1739_s10 = smov 4   ;;  %s1740_s17 = smov 64  }
  0x31   : > { %1170 = dma.hbm_to_vmem [thread:$0]  (!%p1622_p2), %s290_s23, 128, %s292_s21, %s280_s22, %s1740_s17, %s1740_s17, %s1739_s10  }
  0x32   : > { %303 = sbr.rel (%p1562_p8) target bundleno = 1200 (0x4b0), region = 48  ;;  %s1642_s11 = sand.u32 (!%p1562_p8), 1, %s1460_s25  }
  0x33   : > { %s951_s1 = sshll.u32 (!%p1562_p8), %s1642_s11, 3  ;;  %s306_s20 = scalar_lea.sflag (!%p1562_p8), [#allocation3], %s1642_s11 }
  0x34   : > { %s1648_s15 = scalar_lea.vmem (!%p1562_p8), [#allocation2], %s951_s1 }
  0x37   : > { %1439 = dma.done.wait (%p1549_p4), %s306_s20, 128  }
  0x38   : > { %1441 = vsyncadd (%p1549_p4), %s306_s20, 4294967168 }
  0x39   : > { %1443 = dma.done.wait (%p46_p1), [#allocation6], 2080  }
  0x3a   : > { %1445 = vsyncadd (%p46_p1), [#allocation6], 4294965216 }
  0x3b   : > { %1447 = dma.done.wait (%p46_p1), [#allocation9], 2080  }
  0x3c   : > { %1449 = vsyncadd (%p46_p1), [#allocation9], 4294965216  ;;  %v1103_v0 = vld [vmem:[#allocation5 + $0x38] sm:$0xff]  ;;  %v1102_v1 = vld [vmem:[#allocation5 + $0x30] sm:$0xff]  ;;  %v1476_v35 = vmov 128.0   ;;  %s1128_s16 = sshll.u32 %s1540_s28, 3 }
  0x3d   : > { %439 = vmatpush.bf16.msra.mxu0 %v1103_v0  ;;  %v1111_v2 = vld [vmem:[#allocation8 + $0x38] sm:$0xff]  ;;  %v1101_v3 = vld [vmem:[#allocation5 + $0x28] sm:$0xff]  ;;  %v1110_v4 = vld [vmem:[#allocation8 + $0x30] sm:$0xff]  ;;  %1234 = vrcp.f32 %v1476_v35  ;;  %s825_s20 = scalar_lea.hbm %s1728_s7, %s1128_s16  ;;  %s814_s28 = scalar_lea.sflag [#allocation4], %s1642_s11 }
  0x3e   : > { %522 = vmatpush.bf16.msra.mxu1 %v1111_v2  ;;  %v1109_v5 = vld [vmem:[#allocation8 + $0x28] sm:$0xff]  ;;  %v1100_v6 = vld [vmem:[#allocation5 + $0x20] sm:$0xff]  ;;  %v1099_v8 = vld [vmem:[#allocation5 + $0x18] sm:$0xff]  ;;  %s828_s12 = sshll.u32 %s825_s20, 4  ;;  %s829_s12 = int_to_ptr.hbm [resolvable:$true] %s828_s12 }
  0x3f   : > { %v1108_v7 = vld [vmem:[#allocation8 + $0x20] sm:$0xff]  ;;  %v1098_v9 = vld [vmem:[#allocation5 + $0x10] sm:$0xff]  ;;  %v1107_v13 = vld [vmem:[#allocation8 + $0x18] sm:$0xff]  ;;  %s1408_s19 = sshra.s32 %s829_s12, 4  ;;  %s1409_s19 = int_to_ptr.hbm [resolvable:$true] %s1408_s19 }
  0x40   : > { %v1097_v10 = vld [vmem:[#allocation5 + $0x8] sm:$0xff]  ;;  %v1096_v11 = vld [vmem:[#allocation5] sm:$0xff]  ;;  %v1095_v12 = vld [vmem:[%s1648_s15] sm:$0xff]  ;;  %s1410_s21 = scalar_lea.hbm %s1409_s19, 8  ;;  %p1415_p11 = scmp.lt.s32.totalorder %s1409_s19, %s1728_s7 }
  0x41   : > { %440 = vmatpush.bf16.msra.mxu0 %v1102_v1  ;;  %v1106_v14 = vld [vmem:[#allocation8 + $0x10] sm:$0xff]  ;;  %v1105_v15 = vld [vmem:[#allocation8 + $0x8] sm:$0xff]  ;;  %v1104_v16 = vld [vmem:[#allocation8] sm:$0xff]  ;;  %p1411_p1 = scmp.ne.s32.totalorder %s1409_s19, %s1410_s21 }
  0x42   : > { %523 = vmatpush.bf16.msra.mxu1 %v1110_v4  ;;  %v1226_v18 = vld [vmem:[#allocation7] ss:$0 sm:$0xff]  ;;  %v363_v25 = vld [vmem:[%s1648_s15] sm:$0xff]   ;;  %v1117_v52 = vld [vmem:[#allocation5 + $0x68] sm:$0xff]  ;;  %s360_s15 = scalar_lea.vmem [#allocation11], %s951_s1  ;;  %s1414_s1 = scalar_lea.hbm %s1728_s7, 16 }
  0x43   : > { %v1227_v26 = vld [vmem:[%s1725_s4] ss:$0 sm:$0xff]  ;;  %v365_v27 = vunpack.c.l.bf16 %v363_v25  ;;  %v366_v31 = vunpack.c.h.bf16 %v363_v25  ;;  %v1235_v36 = vpop.eup %1234  ;;  %v1119_v50 = vld [vmem:[#allocation5 + $0x78] sm:$0xff]  ;;  %v1116_v53 = vld [vmem:[#allocation5 + $0x60] sm:$0xff]  ;;  %s826_s30 = sshll.u32 %s360_s15, 4  ;;  %p1412_p4 = pnand %p1411_p1, %p1609_p3  ;;  %s827_s30 = int_to_ptr.vmem [resolvable:$true] %s826_s30 }
  0x44   : > { %v543_v37 = vmul.f32 128.0, %v1235_v36  ;;  %vm547_vm0 = vweird.f32 %v1235_v36  ;;  %661 = vmatpush.bf16.msra.mxu2 %v1119_v50  ;;  %v1118_v51 = vld [vmem:[#allocation5 + $0x70] sm:$0xff]  ;;  %v1115_v54 = vld [vmem:[#allocation5 + $0x58] sm:$0xff]  ;;  %v1113_v56 = vld [vmem:[#allocation5 + $0x48] sm:$0xff]  ;;  %p1416_p2 = scmp.lt.s32.totalorder %s1414_s1, %s1410_s21 }
  0x45   : > { %441 = vmatpush.bf16.msra.mxu0 %v1101_v3  ;;  %v1114_v55 = vld [vmem:[#allocation5 + $0x50] sm:$0xff]  ;;  %v1112_v58 = vld [vmem:[#allocation5 + $0x40] sm:$0xff]  ;;  %p1413_p8 = pneg %p1412_p4 }
  0x46   : > { %524 = vmatpush.bf16.msra.mxu1 %v1109_v5  ;;  %v544_v38 = vsub.f32 1.0, %v543_v37  ;;  %v1127_v61 = vld [vmem:[#allocation8 + $0x78] sm:$0xff]  ;;  %v1126_v0 = vld [vmem:[#allocation8 + $0x70] sm:$0xff]  ;;  %v1125_v4 = vld [vmem:[#allocation8 + $0x68] sm:$0xff]  ;;  %p1417_p9 = por %p1416_p2, %p1415_p11 }
  0x47   : > { %745 = vmatpush.bf16.msra.mxu3 %v1127_v61 }
  0x48   : > { %v545_v39 = vmul.f32 %v1235_v36, %v544_v38  ;;  %662 = vmatpush.bf16.msra.mxu2 %v1118_v51  ;;  %p1418_p10 = pnand %p1417_p9, %p1413_p8 }
  0x49   : > { %442 = vmatpush.bf16.msra.mxu0 %v1100_v6 }
  0x4a   : > { %525 = vmatpush.bf16.msra.mxu1 %v1108_v7  ;;  %v546_v40 = vadd.f32 %v1235_v36, %v545_v39  ;;  %v1124_v7 = vld [vmem:[#allocation8 + $0x60] sm:$0xff]  ;;  %v1231_v39 = vld [vmem:[%s1725_s4 + $0x1] ss:$0 sm:$0xff] }
  0x4b   : > { %746 = vmatpush.bf16.msra.mxu3 %v1126_v0 }
  0x4c   : > { %v1667_v41 = vsel %vm547_vm0, %v1235_v36, %v546_v40  ;;  %663 = vmatpush.bf16.msra.mxu2 %v1117_v52 }
  0x4d   : > { %443 = vmatpush.bf16.msra.mxu0 %v1099_v8 }
  0x4e   : > { %526 = vmatpush.bf16.msra.mxu1 %v1107_v13 }
  0x4f   : > { %747 = vmatpush.bf16.msra.mxu3 %v1125_v4 }
  0x50   : > { %664 = vmatpush.bf16.msra.mxu2 %v1116_v53 }
  0x51   : > { %444 = vmatpush.bf16.msra.mxu0 %v1098_v9 }
  0x52   : > { %527 = vmatpush.bf16.msra.mxu1 %v1106_v14 }
  0x53   : > { %748 = vmatpush.bf16.msra.mxu3 %v1124_v7 }
  0x54   : > { %665 = vmatpush.bf16.msra.mxu2 %v1115_v54 }
  0x55   : > { %445 = vmatpush.bf16.msra.mxu0 %v1097_v10 }
  0x56   : > { %528 = vmatpush.bf16.msra.mxu1 %v1105_v15 }
  0x58   : > { %666 = vmatpush.bf16.msra.mxu2 %v1114_v55 }
  0x59   : > { %446 = vmatpush.bf16.msra.mxu0 %v1096_v11 }
  0x5a   : > { %529 = vmatpush.bf16.msra.mxu1 %v1104_v16 }
  0x5c   : > { %447 = vmatmul.bf16.vlgmr.msra.gmra.mxu0 %v1095_v12  ;;  %667 = vmatpush.bf16.msra.mxu2 %v1113_v56 }
  0x60   : > { %668 = vmatpush.bf16.msra.mxu2 %v1112_v58 }
  0xd9   : > { %v448_v17 = vpop.f32.mrf.mxu0 }
  0xda   : > { %v449_v19 = vadd.f32 %v1226_v18, %v448_v17  ;;  %v1228_v17 = vld [vmem:[%s1726_s5] ss:$0 sm:$0xff] }
  0xdc   : > { %v453_v22 = vmax.f32 %v449_v19, 0.0 }
  0xe1   : > { %v450_v20 = vpop.f32.mrf.mxu0 }
  0xe2   : > { %v451_v21 = vadd.f32 %v1226_v18, %v450_v20 }
  0xe4   : > { %v454_v23 = vmax.f32 %v451_v21, 0.0 }
  0xe6   : > { %v455_v24 = vpack.c.bf16 %v454_v23, %v453_v22  ;;  %v1229_v22 = vld [vmem:[#allocation10] ss:$0 sm:$0xff] }
  0xe8   : > { %530 = vmatmul.bf16.vlgmr.msra.gmra.mxu1 %v455_v24 }
 0x165   : > { %v531_v28 = vpop.f32.mrf.mxu1 }
 0x166   : > { %v532_v29 = vadd.f32 %v1227_v26, %v531_v28  ;;  %v1122_v28 = vld [vmem:[#allocation8 + $0x50] sm:$0xff] }
 0x168   : > { %v536_v30 = vadd.f32 %v532_v29, %v365_v27  ;;  %v1123_v27 = vld [vmem:[#allocation8 + $0x58] sm:$0xff]  ;;  %v1121_v29 = vld [vmem:[#allocation8 + $0x48] sm:$0xff] }
 0x169   : > { %749 = vmatpush.bf16.msra.mxu3 %v1123_v27 }
 0x16a   : > { %538 = vadd.xlane.f32.xlu0 %v536_v30 }
 0x16d   : > { %v533_v32 = vpop.f32.mrf.mxu1  ;;  %750 = vmatpush.bf16.msra.mxu3 %v1122_v28 }
 0x16e   : > { %v534_v33 = vadd.f32 %v1227_v26, %v533_v32  ;;  %v1230_v32 = vld [vmem:[#allocation7 + $0x1] ss:$0 sm:$0xff] }
 0x170   : > { %v537_v34 = vadd.f32 %v534_v33, %v366_v31 }
 0x171   : > { %751 = vmatpush.bf16.msra.mxu3 %v1121_v29 }
 0x172   : > { %540 = vadd.xlane.f32.xlu0 %v537_v34 }
 0x1dd   : > { %v539_v42 = vpop.xlane.xlu0 %538 }
 0x1de   : > { %v549_v43 = vmul.f32 %v1667_v41, %v539_v42 }
 0x1e0   : > { %v551_v44 = vsub.f32 %v536_v30, %v549_v43  ;;  %v1120_v30 = vld [vmem:[#allocation8 + $0x40] sm:$0xff] }
 0x1e1   : > { %752 = vmatpush.bf16.msra.mxu3 %v1120_v30 }
 0x1e2   : > { %v553_v45 = vmul.f32 %v551_v44, %v551_v44 }
 0x1e4   : > { %555 = vadd.xlane.f32.xlu1 %v553_v45 }
 0x1e5   : > { %v541_v46 = vpop.xlane.xlu0 %540 }
 0x1e6   : > { %v550_v47 = vmul.f32 %v1667_v41, %v541_v46 }
 0x1e8   : > { %v552_v48 = vsub.f32 %v537_v34, %v550_v47 }
 0x1ea   : > { %v554_v49 = vmul.f32 %v552_v48, %v552_v48 }
 0x1ec   : > { %557 = vadd.xlane.f32.xlu1 %v554_v49 }
 0x257   : > { %v556_v57 = vpop.xlane.xlu1 %555 }
 0x258   : > { %v559_v59 = vmul.f32 %v556_v57, %v1667_v41 }
 0x25a   : > { %v561_v60 = vadd.f32 1e-12, %v559_v59 }
 0x25c   : > { %1236 = vrsqrt.f32 %v561_v60  ;;  %vm569_vm2 = vweird.f32 %v561_v60 }
 0x25f   : > { %v558_v62 = vpop.xlane.xlu1 %557 }
 0x260   : > { %v560_v63 = vmul.f32 %v558_v62, %v1667_v41 }
 0x262   : > { %v1237_v1 = vpop.eup %1236  ;;  %v562_v2 = vadd.f32 1e-12, %v560_v63 }
 0x263   : > { %v564_v3 = vmul.f32 %v1237_v1, %v561_v60  ;;  %vm570_vm1 = vweird.f32 %v1237_v1 }
 0x264   : > { %1238 = vrsqrt.f32 %v562_v2  ;;  %vm571_vm3 = vmor %vm569_vm2, %vm570_vm1  ;;  %vm579_vm5 = vweird.f32 %v562_v2 }
 0x265   : > { %v565_v5 = vmul.f32 %v1237_v1, %v564_v3 }
 0x267   : > { %v566_v6 = vmul.f32 0.5, %v565_v5 }
 0x269   : > { %v567_v8 = vsub.f32 1.5, %v566_v6 }
 0x26a   : > { %v1239_v9 = vpop.eup %1238 }
 0x26b   : > { %v568_v10 = vmul.f32 %v1237_v1, %v567_v8  ;;  %v574_v11 = vmul.f32 %v1239_v9, %v562_v2  ;;  %vm580_vm4 = vweird.f32 %v1239_v9 }
 0x26c   : > { %vm581_vm6 = vmor %vm579_vm5, %vm580_vm4 }
 0x26d   : > { %v575_v12 = vmul.f32 %v1239_v9, %v574_v11  ;;  %v572_v14 = vsel %vm571_vm3, %v1237_v1, %v568_v10 }
 0x26e   : > { %v583_v16 = vmul.f32 %v572_v14, %v551_v44 }
 0x26f   : > { %v576_v13 = vmul.f32 0.5, %v575_v12  ;;  %v1233_v12 = vld [vmem:[#allocation10 + $0x1] ss:$0 sm:$0xff] }
 0x270   : > { %v587_v21 = vmul.f32 %v1228_v17, %v583_v16 }
 0x271   : > { %v577_v15 = vsub.f32 1.5, %v576_v13 }
 0x272   : > { %v591_v24 = vadd.f32 %v1229_v22, %v587_v21 }
 0x273   : > { %v578_v18 = vmul.f32 %v1239_v9, %v577_v15 }
 0x275   : > { %v582_v19 = vsel %vm581_vm6, %v1239_v9, %v578_v18 }
 0x276   : > { %v584_v20 = vmul.f32 %v582_v19, %v552_v48 }
 0x278   : > { %v588_v23 = vmul.f32 %v1228_v17, %v584_v20 }
 0x27a   : > { %v592_v25 = vadd.f32 %v1229_v22, %v588_v23 }
 0x27c   : > { %v593_v26 = vpack.c.bf16 %v592_v25, %v591_v24 }
 0x27e   : > { %669 = vmatmul.bf16.vlgmr.msra.gmra.mxu2 %v593_v26 }
 0x301   : > { %v670_v31 = vpop.f32.mrf.mxu2 }
 0x302   : > { %v671_v33 = vadd.f32 %v1230_v32, %v670_v31 }
 0x304   : > { %v675_v36 = vmax.f32 %v671_v33, 0.0 }
 0x309   : > { %v672_v34 = vpop.f32.mrf.mxu2 }
 0x30a   : > { %v673_v35 = vadd.f32 %v1230_v32, %v672_v34 }
 0x30c   : > { %v676_v37 = vmax.f32 %v673_v35, 0.0 }
 0x30e   : > { %v677_v38 = vpack.c.bf16 %v676_v37, %v675_v36 }
 0x310   : > { %753 = vmatmul.bf16.vlgmr.msra.gmra.mxu3 %v677_v38 }
 0x393   : > { %v754_v40 = vpop.f32.mrf.mxu3 }
 0x394   : > { %v755_v42 = vadd.f32 %v1231_v39, %v754_v40 }
 0x396   : > { %v759_v43 = vadd.f32 %v755_v42, %v591_v24 }
 0x398   : > { %761 = vadd.xlane.f32.xlu2 %v759_v43 }
 0x39b   : > { %v756_v44 = vpop.f32.mrf.mxu3 }
 0x39c   : > { %v757_v45 = vadd.f32 %v1231_v39, %v756_v44 }
 0x39e   : > { %v760_v46 = vadd.f32 %v757_v45, %v592_v25 }
 0x3a0   : > { %763 = vadd.xlane.f32.xlu2 %v760_v46 }
 0x40b   : > { %v762_v47 = vpop.xlane.xlu2 %761 }
 0x40c   : > { %v765_v48 = vmul.f32 %v762_v47, %v1667_v41 }
 0x40e   : > { %v767_v49 = vsub.f32 %v759_v43, %v765_v48 }
 0x410   : > { %v769_v50 = vmul.f32 %v767_v49, %v767_v49 }
 0x412   : > { %771 = vadd.xlane.f32.xlu0 %v769_v50 }
 0x413   : > { %v764_v51 = vpop.xlane.xlu2 %763 }
 0x414   : > { %v766_v52 = vmul.f32 %v764_v51, %v1667_v41 }
 0x416   : > { %v768_v53 = vsub.f32 %v760_v46, %v766_v52 }
 0x418   : > { %v770_v54 = vmul.f32 %v768_v53, %v768_v53 }
 0x41a   : > { %773 = vadd.xlane.f32.xlu1 %v770_v54 }
 0x485   : > { %v772_v55 = vpop.xlane.xlu0 %771 }
 0x486   : > { %v775_v56 = vmul.f32 %v772_v55, %v1667_v41 }
 0x488   : > { %v777_v57 = vadd.f32 1e-12, %v775_v56 }
 0x48a   : > { %1240 = vrsqrt.f32 %v777_v57  ;;  %vm785_vm8 = vweird.f32 %v777_v57 }
 0x48d   : > { %v774_v58 = vpop.xlane.xlu1 %773 }
 0x48e   : > { %v776_v59 = vmul.f32 %v774_v58, %v1667_v41  ;;  %v1232_v41 = vld [vmem:[%s1726_s5 + $0x1] ss:$0 sm:$0xff] }
 0x490   : > { %v1241_v60 = vpop.eup %1240  ;;  %v778_v61 = vadd.f32 1e-12, %v776_v59 }
 0x491   : > { %v780_v62 = vmul.f32 %v1241_v60, %v777_v57  ;;  %vm786_vm7 = vweird.f32 %v1241_v60 }
 0x492   : > { %1242 = vrsqrt.f32 %v778_v61  ;;  %vm787_vm9 = vmor %vm785_vm8, %vm786_vm7  ;;  %vm795_vm11 = vweird.f32 %v778_v61 }
 0x493   : > { %v781_v63 = vmul.f32 %v1241_v60, %v780_v62 }
 0x495   : > { %v782_v0 = vmul.f32 0.5, %v781_v63 }
 0x497   : > { %v783_v1 = vsub.f32 1.5, %v782_v0 }
 0x498   : > { %v1243_v2 = vpop.eup %1242 }
 0x499   : > { %v784_v3 = vmul.f32 %v1241_v60, %v783_v1  ;;  %v790_v4 = vmul.f32 %v1243_v2, %v778_v61  ;;  %vm796_vm10 = vweird.f32 %v1243_v2 }
 0x49a   : > { %vm797_vm12 = vmor %vm795_vm11, %vm796_vm10 }
 0x49b   : > { %v791_v5 = vmul.f32 %v1243_v2, %v790_v4  ;;  %v788_v6 = vsel %vm787_vm9, %v1241_v60, %v784_v3 }
 0x49c   : > { %v799_v9 = vmul.f32 %v788_v6, %v767_v49 }
 0x49d   : > { %v792_v7 = vmul.f32 0.5, %v791_v5 }
 0x49e   : > { %v803_v13 = vmul.f32 %v1232_v41, %v799_v9 }
 0x49f   : > { %v793_v8 = vsub.f32 1.5, %v792_v7 }
 0x4a0   : > { %v807_v16 = vadd.f32 %v1233_v12, %v803_v13 }
 0x4a1   : > { %v794_v10 = vmul.f32 %v1243_v2, %v793_v8 }
 0x4a3   : > { %v798_v11 = vsel %vm797_vm12, %v1243_v2, %v794_v10 }
 0x4a4   : > { %v800_v14 = vmul.f32 %v798_v11, %v768_v53 }
 0x4a6   : > { %v804_v15 = vmul.f32 %v1232_v41, %v800_v14 }
 0x4a8   : > { %v808_v17 = vadd.f32 %v1233_v12, %v804_v15 }
 0x4aa   : > { %v1132_v18 = vpack.c.bf16 %v808_v17, %v807_v16 }
 0x4ac   : > { %1133 = vst [vmem:[%s360_s15] sm:$0xff] %v1132_v18  }
 0x4ad   : > { %1421 = shalt.err (!%p1418_p10)
}
 0x4ae   : > { %s1477_s11 = smov 64   ;;  %s1478_s16 = smov 4  }
 0x4af   : > { %1152 = dma.vmem_to_hbm [thread:$0]  (%p1609_p3), %s827_s30, 128, %s829_s12, %s814_s28, %s1477_s11, %s1477_s11, %s1478_s16  }
 0x4b0 PF: > { %s843_s10 = sand.u32 1, %s1456_s24   ;;  %p1741_p12 = scmp.ge.s32.totalorder %s1468_s27, 2 }
 0x4b1   : > { %s844_s17 = scalar_lea.sflag [#allocation4], %s843_s10 }
 0x4b2   : > { %p1172_p13 = pnand %p1741_p12, %p1554_p6 }
 0x4b4   : > { %p1173_p0 = pneg %p1172_p13 }
 0x4b6   : > { %1451 = dma.done.wait (%p1173_p0), %s844_s17, 128  }
 0x4b7   : > { %1453 = vsyncadd (%p1173_p0), %s844_s17, 4294967168  ;;  %p22_p5 = scmp.ge.s32.totalorder %s1599_s18, 4   ;;  %s1742_s24 = smov %s1460_s25 }
 0x4b8   : > { %s1743_s25 = smov %s1464_s26  ;;  %s1744_s26 = smov %s1615_s9 }
 0x4b9   : > { %s1745_s27 = smov %s1599_s18  ;;  %24 = sbr.rel (!%p22_p5) target bundleno = 9 (0x9), region = 111 }
 0x4be   :  { %850 = vsyncpa [#allocation3], 1 }
 0x4bf   :  { %852 = vsyncpa [#allocation3 + $0x1], 1 }
 0x4c0   :  { %853 = vsyncpa [#allocation6], 1 }
 0x4c1   :  { %854 = vsyncpa [#allocation9], 1 }
 0x4c2   :  { %855 = vsyncpa [#allocation4], 1 }
 0x4c3   :  { %857 = vsyncpa [#allocation4 + $0x1], 1 }

</bundles_post_ra>
